<compile_context>
chip_gen: v7x
topology: tpu7x:2x2x1
jax: 0.10.0
libtpu: 0.0.40
codegen_flags: <defaults>
</compile_context>

<pallas_src>
import functools

import jax
import jax.numpy as jnp
from jax import lax
from jax.experimental import pallas as pl
from jax.experimental.pallas import tpu as pltpu


_DN = (((1,), (1,)), ((), ()))   # contract last dims of both operands: A @ B.T


def _l2norm(v):
    # F.normalize(v, p=2, dim=1) with eps=1e-12 (rsqrt -> EUP slot).
    sq = jnp.sum(v * v, axis=1, keepdims=True)
    return v * lax.rsqrt(jnp.maximum(sq, 1e-24))


def _hyp_kernel(xi_ref, yi_ref, li_ref,        # row-tile inputs
                xj_ref, yj_ref, lj_ref,        # col-tile inputs (pairwise term)
                p_ref,                         # proxies (C, D)
                o_ref,                         # (1, 8, 128) per-row-tile partials
                xn_scr, yn_scr, si_scr,        # row-tile caches (VMEM scratch)
                *, threshold, alpha):
    f32, bf16 = jnp.float32, jnp.bfloat16
    j = pl.program_id(1)

    lane = lax.broadcasted_iota(jnp.int32, (1, 8, 128), 2)
    sub = lax.broadcasted_iota(jnp.int32, (1, 8, 128), 1)

    def place(val, idx):
        # val: (1, 1) partial sum -> placed at out[0, 0, idx], zeros elsewhere.
        return jnp.where(jnp.logical_and(sub == 0, lane == idx), val, 0.0)

    # ---- once per row tile: normalize + cache, and the proxy (pointwise) term ----
    @pl.when(j == 0)
    def _():
        xi = _l2norm(xi_ref[...].astype(f32))            # (tb, D)
        yi = _l2norm(yi_ref[...].astype(f32))            # (tb, D)
        li = li_ref[...].astype(f32)                     # (tb, C), exact 0/1
        xi_b = xi.astype(bf16)
        yi_b = yi.astype(bf16)
        xn_scr[...] = xi_b                               # cache for the j sweep
        yn_scr[...] = yi_b
        si_scr[...] = jnp.sum(li, axis=1, keepdims=True)  # per-row label counts

        pn = _l2norm(p_ref[...].astype(f32)).astype(bf16)            # (C, D)
        cos = lax.dot_general(xi_b, pn, _DN, preferred_element_type=f32)    # (tb, C)
        cos_t = lax.dot_general(yi_b, pn, _DN, preferred_element_type=f32)  # (tb, C)

        # labels are {0,1}: masks become multiplies (no compare+select pair).
        pos_num = jnp.sum(li * (2.0 - cos - cos_t), keepdims=True)
        neg_num = jnp.sum((1.0 - li) * (jnp.maximum(cos - threshold, 0.0)
                                        + jnp.maximum(cos_t - threshold, 0.0)),
                          keepdims=True)
        p_cnt = jnp.sum(li, keepdims=True)               # count(label != 0)
        o_ref[...] = place(pos_num, 0) + place(neg_num, 1) + place(p_cnt, 2)

    # ---- pairwise regularizer (compiled out entirely when alpha == 0) ----
    if alpha > 0:
        xj_b = _l2norm(xj_ref[...].astype(f32)).astype(bf16)   # (tbj, D)
        yj_b = _l2norm(yj_ref[...].astype(f32)).astype(bf16)   # (tbj, D)
        lj_b = lj_ref[...]                                     # (tbj, C) bf16 0/1

        xi_b = xn_scr[...]                                     # cached bf16 row tile
        yi_b = yn_scr[...]
        sum_i = si_scr[...]                                    # (tbi, 1)

        # lab_sim is exact for 0/1 labels with f32 accumulation.
        lab_sim = lax.dot_general(li_ref[...], lj_b, _DN,
                                  preferred_element_type=f32)  # (tbi, tbj)
        # Column-tile label row-sums directly in lane layout (tiny K=C dot).
        ones_c = jnp.ones((1, lj_b.shape[1]), bf16)
        sum_j = lax.dot_general(ones_c, lj_b, _DN,
                                preferred_element_type=f32)    # (1, tbj)

        # pair selector: (label_i.sum() > 1) & (label_j.sum() > 1) & (lab_sim == 0)
        pair_ok = jnp.logical_and(sum_i > 1.0, sum_j > 1.0)    # VPU broadcast
        mask = jnp.where(jnp.logical_and(pair_ok, lab_sim == 0.0), 1.0, 0.0)

        x_sim = lax.dot_general(xi_b, xj_b, _DN, preferred_element_type=f32)
        t_sim = lax.dot_general(yi_b, yj_b, _DN, preferred_element_type=f32)
        xt_sim = lax.dot_general(xi_b, yj_b, _DN, preferred_element_type=f32)

        reg = (jnp.maximum(x_sim - threshold, 0.0)
               + jnp.maximum(t_sim - threshold, 0.0)
               + jnp.maximum(xt_sim - threshold, 0.0))

        reg_sum = jnp.sum(reg * mask, keepdims=True)
        cnt_sum = jnp.sum(mask, keepdims=True)
        o_ref[...] += place(reg_sum, 3) + place(cnt_sum, 4)


def hyp_loss(x, y, label, proxies, *, threshold, alpha,
             tile_b=512, vmem_limit_bytes=48 * 1024 * 1024):
    """HyP forward loss. `label` must be multi-hot {0,1}.

    tile_b=512 fits comfortably in v7x's 64 MiB VMEM with the 48 MiB scoped
    limit; on v5e/v6e (128 MiB VMEM) tile_b can be raised to 1024 with a
    larger vmem_limit_bytes.
    """
    B, D = x.shape
    C = proxies.shape[0]
    assert y.shape == (B, D) and label.shape == (B, C)

    tb = B if B <= tile_b else tile_b
    assert B % tb == 0, "batch must be a multiple of the batch tile"
    if tb != B:
        assert tb % 8 == 0, "batch tile must be a multiple of 8 (sublane)"
    n = B // tb
    alpha = float(alpha)
    threshold = float(threshold)

    lab = label.astype(jnp.bfloat16)     # exact for {0,1} labels; halves label DMA

    grid = (n, n) if alpha > 0 else (n, 1)

    row_d = pl.BlockSpec((tb, D), lambda i, j: (i, 0))
    row_c = pl.BlockSpec((tb, C), lambda i, j: (i, 0))
    if alpha > 0:
        col_d = pl.BlockSpec((tb, D), lambda i, j: (j, 0))
        col_c = pl.BlockSpec((tb, C), lambda i, j: (j, 0))
    else:
        # Pairwise branch is compiled out: pin the (unused) column blocks so the
        # pipeline fetches them only once (block index never changes).
        col_d = pl.BlockSpec((tb, D), lambda i, j: (0, 0))
        col_c = pl.BlockSpec((tb, C), lambda i, j: (0, 0))

    kernel = functools.partial(_hyp_kernel, threshold=threshold, alpha=alpha)

    parts = pl.pallas_call(
        kernel,
        out_shape=jax.ShapeDtypeStruct((n, 8, 128), jnp.float32),
        grid=grid,
        in_specs=[row_d, row_d, row_c,                 # x_i, y_i, label_i
                  col_d, col_d, col_c,                 # x_j, y_j, label_j
                  pl.BlockSpec((C, D), lambda i, j: (0, 0))],   # proxies
        out_specs=pl.BlockSpec((1, 8, 128), lambda i, j: (i, 0, 0)),
        scratch_shapes=[pltpu.VMEM((tb, D), jnp.bfloat16),   # cached normalized x_i
                        pltpu.VMEM((tb, D), jnp.bfloat16),   # cached normalized y_i
                        pltpu.VMEM((tb, 1), jnp.float32)],   # cached label row-sums
        compiler_params=pltpu.CompilerParams(
            # Row axis is megacore-parallel (each row tile owns its output
            # block); the column axis accumulates into that block -> arbitrary.
            dimension_semantics=("parallel", "arbitrary"),
            vmem_limit_bytes=int(vmem_limit_bytes)),
    )(x, y, lab, x, y, lab, proxies)

    # ---- tiny finalize in pure JAX (sums over row tiles) ----
    sums = jnp.sum(parts, axis=(0, 1))                 # (128,), lanes 0..4 used
    P = sums[2]
    N = float(B * C) - P                                # count(label == 0)
    loss = sums[0] / P + sums[1] / N
    if alpha > 0:
        cnt = sums[4]
        loss = loss + jnp.where(cnt > 0.0,
                                alpha * sums[3] / jnp.maximum(cnt, 1.0),
                                0.0)
    return loss


def hyp_ref(x, y, label, proxies, threshold, alpha):
    """Pure-JAX reference (masked, static-shape formulation of the PyTorch code)."""
    def l2n(v):
        nrm = jnp.sqrt(jnp.sum(v * v, axis=1, keepdims=True))
        return v / jnp.maximum(nrm, 1e-12)

    xn, yn, pn = l2n(x), l2n(y), l2n(proxies)
    cos = xn @ pn.T
    cos_t = yn @ pn.T
    pos, neg = 1.0 - cos, jnp.maximum(cos - threshold, 0.0)
    pos_t, neg_t = 1.0 - cos_t, jnp.maximum(cos_t - threshold, 0.0)
    P = jnp.sum(label != 0).astype(jnp.float32)
    N = jnp.sum(label == 0).astype(jnp.float32)
    loss = (jnp.sum(jnp.where(label == 1, pos, 0.0)) / P
            + jnp.sum(jnp.where(label == 0, neg, 0.0)) / N
            + jnp.sum(jnp.where(label == 1, pos_t, 0.0)) / P
            + jnp.sum(jnp.where(label == 0, neg_t, 0.0)) / N)
    if alpha > 0:
        sel = jnp.sum(label, axis=1) > 1
        pair = sel[:, None] & sel[None, :]
        lab_sim = label @ label.T
        m = pair & (lab_sim == 0)
        cnt = jnp.sum(m).astype(jnp.float32)

        def reg(sim):
            s = jnp.sum(jnp.where(m, alpha * jnp.maximum(sim - threshold, 0.0), 0.0))
            return jnp.where(cnt > 0, s / jnp.maximum(cnt, 1.0), 0.0)

        loss = loss + reg(xn @ xn.T) + reg(yn @ yn.T) + reg(xn @ yn.T)
    return loss


if __name__ == "__main__":
    threshold, alpha = 0.3, 0.8
    key = jax.random.PRNGKey(0)

    # ---- small single-tile case (module defaults: numclass=80, output_dim=16) ----
    B, C, D = 8, 80, 16
    kx, ky, kp, kl = jax.random.split(key, 4)
    x = jax.random.normal(kx, (B, D), jnp.float32)
    y = jax.random.normal(ky, (B, D), jnp.float32)
    # proxies ~ kaiming_normal_(mode='fan_out'): std = sqrt(2 / numclass)
    proxies = jax.random.normal(kp, (C, D), jnp.float32) * jnp.sqrt(2.0 / C)
    # deterministic multi-hot labels; at least one positive per row
    label = (jax.random.uniform(kl, (B, C)) < 0.06).astype(jnp.float32)
    label = label.at[jnp.arange(B), jnp.arange(B) % C].set(1.0)

    out = hyp_loss(x, y, label, proxies, threshold=threshold, alpha=alpha)
    out = jax.block_until_ready(out)
    ref = hyp_ref(x, y, label, proxies, threshold, alpha)
    assert jnp.allclose(out, ref, rtol=2e-2, atol=2e-2), (float(out), float(ref))

    # ---- alpha == 0 path (proxy-only configuration, column DMAs pinned) ----
    out0 = hyp_loss(x, y, label, proxies, threshold=threshold, alpha=0.0)
    out0 = jax.block_until_ready(out0)
    ref0 = hyp_ref(x, y, label, proxies, threshold, 0.0)
    assert jnp.allclose(out0, ref0, rtol=2e-2, atol=2e-2), (float(out0), float(ref0))

    # ---- multi-tile case exercising the 2D grid + megacore-parallel row axis ----
    B2 = 256
    kx2, ky2, kl2 = jax.random.split(jax.random.PRNGKey(1), 3)
    x2 = jax.random.normal(kx2, (B2, D), jnp.float32)
    y2 = jax.random.normal(ky2, (B2, D), jnp.float32)
    label2 = (jax.random.uniform(kl2, (B2, C)) < 0.06).astype(jnp.float32)
    label2 = label2.at[jnp.arange(B2), jnp.arange(B2) % C].set(1.0)

    out2 = hyp_loss(x2, y2, label2, proxies, threshold=threshold, alpha=alpha,
                    tile_b=128)
    out2 = jax.block_until_ready(out2)
    ref2 = hyp_ref(x2, y2, label2, proxies, threshold, alpha)
    assert jnp.allclose(out2, ref2, rtol=2e-2, atol=2e-2), (float(out2), float(ref2))

    print("KERNEL_OK")
</pallas_src>

<mosaic_0001>
module attributes {stable_mosaic.version = 11 : i64} {
  func.func @_hyp_kernel(%arg0: i32, %arg1: i32, %arg2: memref<8x16xf32, #tpu.memory_space<vmem>>, %arg3: memref<8x16xf32, #tpu.memory_space<vmem>>, %arg4: memref<8x80xbf16, #tpu.memory_space<vmem>>, %arg5: memref<8x16xf32, #tpu.memory_space<vmem>>, %arg6: memref<8x16xf32, #tpu.memory_space<vmem>>, %arg7: memref<8x80xbf16, #tpu.memory_space<vmem>>, %arg8: memref<80x16xf32, #tpu.memory_space<vmem>>, %arg9: memref<1x8x128xf32, #tpu.memory_space<vmem>>, %arg10: memref<8x16xbf16, #tpu.memory_space<vmem>>, %arg11: memref<8x16xbf16, #tpu.memory_space<vmem>>, %arg12: memref<8x1xf32, #tpu.memory_space<vmem>>) attributes {dimension_semantics = [#tpu.dimension_semantics<parallel>, #tpu.dimension_semantics<arbitrary>], iteration_bounds = array<i64: 1, 1>, scalar_prefetch = 0 : i64, scratch_operands = 3 : i64, tpu.core_type = #tpu.core_type<tc>, window_params = [{transform_indices = @transform_0, window_bounds = array<i64: 8, 16>}, {transform_indices = @transform_1, window_bounds = array<i64: 8, 16>}, {transform_indices = @transform_2, window_bounds = array<i64: 8, 80>}, {transform_indices = @transform_3, window_bounds = array<i64: 8, 16>}, {transform_indices = @transform_4, window_bounds = array<i64: 8, 16>}, {transform_indices = @transform_5, window_bounds = array<i64: 8, 80>}, {pipeline_mode = #tpu.pipeline_mode<synchronous>, transform_indices = @transform_6, window_bounds = array<i64: 80, 16>}, {transform_indices = @transform_7, window_bounds = array<i64: 1, 8, 128>}]} {
    %0 = tpu.iota {dimensions = array<i32: 2>} : vector<1x8x128xi32>
    %1 = tpu.iota {dimensions = array<i32: 1>} : vector<1x8x128xi32>
    %c0_i32 = arith.constant 0 : i32
    %2 = arith.cmpi eq, %arg1, %c0_i32 : i32
    %3 = arith.extui %2 : i1 to i32
    %c0_i32_0 = arith.constant 0 : i32
    %4 = arith.cmpi ne, %3, %c0_i32_0 : i32
    scf.if %4 {
      %c0_46 = arith.constant 0 : index
      %c0_47 = arith.constant 0 : index
      %96 = vector.load %arg2[%c0_46, %c0_47] : memref<8x16xf32, #tpu.memory_space<vmem>>, vector<8x16xf32>
      %97 = arith.mulf %96, %96 : vector<8x16xf32>
      %cst_48 = arith.constant dense<0.000000e+00> : vector<8xf32>
      %98 = vector.multi_reduction <add>, %97, %cst_48 [1] : vector<8x16xf32> to vector<8xf32>
      %99 = vector.shape_cast %98 : vector<8xf32> to vector<8x1xf32>
      %cst_49 = arith.constant 1.000000e-24 : f32
      %100 = vector.broadcast %cst_49 : f32 to vector<8x1xf32>
      %101 = arith.maximumf %99, %100 : vector<8x1xf32>
      %102 = math.rsqrt %101 : vector<8x1xf32>
      %103 = vector.broadcast %102 : vector<8x1xf32> to vector<8x16xf32>
      %104 = arith.mulf %96, %103 : vector<8x16xf32>
      %c0_50 = arith.constant 0 : index
      %c0_51 = arith.constant 0 : index
      %105 = vector.load %arg3[%c0_50, %c0_51] : memref<8x16xf32, #tpu.memory_space<vmem>>, vector<8x16xf32>
      %106 = arith.mulf %105, %105 : vector<8x16xf32>
      %cst_52 = arith.constant dense<0.000000e+00> : vector<8xf32>
      %107 = vector.multi_reduction <add>, %106, %cst_52 [1] : vector<8x16xf32> to vector<8xf32>
      %108 = vector.shape_cast %107 : vector<8xf32> to vector<8x1xf32>
      %cst_53 = arith.constant 1.000000e-24 : f32
      %109 = vector.broadcast %cst_53 : f32 to vector<8x1xf32>
      %110 = arith.maximumf %108, %109 : vector<8x1xf32>
      %111 = math.rsqrt %110 : vector<8x1xf32>
      %112 = vector.broadcast %111 : vector<8x1xf32> to vector<8x16xf32>
      %113 = arith.mulf %105, %112 : vector<8x16xf32>
      %c0_54 = arith.constant 0 : index
      %c0_55 = arith.constant 0 : index
      %114 = vector.load %arg4[%c0_54, %c0_55] : memref<8x80xbf16, #tpu.memory_space<vmem>>, vector<8x80xbf16>
      %115 = arith.extf %114 : vector<8x80xbf16> to vector<8x80xf32>
      %116 = arith.truncf %104 : vector<8x16xf32> to vector<8x16xbf16>
      %117 = arith.truncf %113 : vector<8x16xf32> to vector<8x16xbf16>
      %c0_56 = arith.constant 0 : index
      %c0_57 = arith.constant 0 : index
      %118 = vector.load %arg10[%c0_56, %c0_57] : memref<8x16xbf16, #tpu.memory_space<vmem>>, vector<8x16xbf16>
      tpu.vector_store %arg10[%c0_56, %c0_57], %116 {strides = array<i32>} : memref<8x16xbf16, #tpu.memory_space<vmem>>, vector<8x16xbf16>,
      %c0_58 = arith.constant 0 : index
      %c0_59 = arith.constant 0 : index
      %119 = vector.load %arg11[%c0_58, %c0_59] : memref<8x16xbf16, #tpu.memory_space<vmem>>, vector<8x16xbf16>
      tpu.vector_store %arg11[%c0_58, %c0_59], %117 {strides = array<i32>} : memref<8x16xbf16, #tpu.memory_space<vmem>>, vector<8x16xbf16>,
      %cst_60 = arith.constant dense<0.000000e+00> : vector<8xf32>
      %120 = vector.multi_reduction <add>, %115, %cst_60 [1] : vector<8x80xf32> to vector<8xf32>
      %121 = vector.shape_cast %120 : vector<8xf32> to vector<8x1xf32>
      %c0_61 = arith.constant 0 : index
      %c0_62 = arith.constant 0 : index
      %122 = vector.load %arg12[%c0_61, %c0_62] : memref<8x1xf32, #tpu.memory_space<vmem>>, vector<8x1xf32>
      tpu.vector_store %arg12[%c0_61, %c0_62], %121 {strides = array<i32>} : memref<8x1xf32, #tpu.memory_space<vmem>>, vector<8x1xf32>,
      %c0_63 = arith.constant 0 : index
      %c0_64 = arith.constant 0 : index
      %123 = vector.load %arg8[%c0_63, %c0_64] : memref<80x16xf32, #tpu.memory_space<vmem>>, vector<80x16xf32>
      %124 = arith.mulf %123, %123 : vector<80x16xf32>
      %cst_65 = arith.constant dense<0.000000e+00> : vector<80xf32>
      %125 = vector.multi_reduction <add>, %124, %cst_65 [1] : vector<80x16xf32> to vector<80xf32>
      %126 = vector.shape_cast %125 : vector<80xf32> to vector<80x1xf32>
      %cst_66 = arith.constant 1.000000e-24 : f32
      %127 = vector.broadcast %cst_66 : f32 to vector<80x1xf32>
      %128 = arith.maximumf %126, %127 : vector<80x1xf32>
      %129 = math.rsqrt %128 : vector<80x1xf32>
      %130 = vector.broadcast %129 : vector<80x1xf32> to vector<80x16xf32>
      %131 = arith.mulf %123, %130 : vector<80x16xf32>
      %132 = arith.truncf %131 : vector<80x16xf32> to vector<80x16xbf16>
      %cst_67 = arith.constant dense<0.000000e+00> : vector<8x80xf32>
      %133 = tpu.matmul %116, %132, %cst_67 {dimension_numbers = #tpu.dot_dimension_numbers<[1], [1], [0], [0], [0, 0, 1, 0], [], []>} : vector<8x16xbf16>, vector<80x16xbf16>, vector<8x80xf32> -> vector<8x80xf32>
      %cst_68 = arith.constant dense<0.000000e+00> : vector<8x80xf32>
      %134 = tpu.matmul %117, %132, %cst_68 {dimension_numbers = #tpu.dot_dimension_numbers<[1], [1], [0], [0], [0, 0, 1, 0], [], []>} : vector<8x16xbf16>, vector<80x16xbf16>, vector<8x80xf32> -> vector<8x80xf32>
      %cst_69 = arith.constant 2.000000e+00 : f32
      %135 = vector.broadcast %cst_69 : f32 to vector<8x80xf32>
      %136 = arith.subf %135, %133 : vector<8x80xf32>
      %137 = arith.subf %136, %134 : vector<8x80xf32>
      %138 = arith.mulf %115, %137 : vector<8x80xf32>
      %139 = vector.shape_cast %138 : vector<8x80xf32> to vector<1x8x80xf32>
      %cst_70 = arith.constant dense<0.000000e+00> : vector<1xf32>
      %140 = vector.multi_reduction <add>, %139, %cst_70 [1, 2] : vector<1x8x80xf32> to vector<1xf32>
      %141 = vector.shape_cast %140 : vector<1xf32> to vector<1x1x1xf32>
      %142 = vector.extract %141[0, 0, 0] : f32 from vector<1x1x1xf32>
      %143 = vector.broadcast %142 : f32 to vector<1x1xf32>
      %cst_71 = arith.constant 1.000000e+00 : f32
      %144 = vector.broadcast %cst_71 : f32 to vector<8x80xf32>
      %145 = arith.subf %144, %115 : vector<8x80xf32>
      %cst_72 = arith.constant 3.000000e-01 : f32
      %146 = vector.broadcast %cst_72 : f32 to vector<8x80xf32>
      %147 = arith.subf %133, %146 : vector<8x80xf32>
      %cst_73 = arith.constant 0.000000e+00 : f32
      %148 = vector.broadcast %cst_73 : f32 to vector<8x80xf32>
      %149 = arith.maximumf %147, %148 : vector<8x80xf32>
      %cst_74 = arith.constant 3.000000e-01 : f32
      %150 = vector.broadcast %cst_74 : f32 to vector<8x80xf32>
      %151 = arith.subf %134, %150 : vector<8x80xf32>
      %cst_75 = arith.constant 0.000000e+00 : f32
      %152 = vector.broadcast %cst_75 : f32 to vector<8x80xf32>
      %153 = arith.maximumf %151, %152 : vector<8x80xf32>
      %154 = arith.addf %149, %153 : vector<8x80xf32>
      %155 = arith.mulf %145, %154 : vector<8x80xf32>
      %156 = vector.shape_cast %155 : vector<8x80xf32> to vector<1x8x80xf32>
      %cst_76 = arith.constant dense<0.000000e+00> : vector<1xf32>
      %157 = vector.multi_reduction <add>, %156, %cst_76 [1, 2] : vector<1x8x80xf32> to vector<1xf32>
      %158 = vector.shape_cast %157 : vector<1xf32> to vector<1x1x1xf32>
      %159 = vector.extract %158[0, 0, 0] : f32 from vector<1x1x1xf32>
      %160 = vector.broadcast %159 : f32 to vector<1x1xf32>
      %161 = vector.shape_cast %115 : vector<8x80xf32> to vector<1x8x80xf32>
      %cst_77 = arith.constant dense<0.000000e+00> : vector<1xf32>
      %162 = vector.multi_reduction <add>, %161, %cst_77 [1, 2] : vector<1x8x80xf32> to vector<1xf32>
      %163 = vector.shape_cast %162 : vector<1xf32> to vector<1x1x1xf32>
      %164 = vector.extract %163[0, 0, 0] : f32 from vector<1x1x1xf32>
      %165 = vector.broadcast %164 : f32 to vector<1x1xf32>
      %c0_i32_78 = arith.constant 0 : i32
      %166 = vector.broadcast %c0_i32_78 : i32 to vector<1x8x128xi32>
      %167 = arith.cmpi eq, %1, %166 : vector<1x8x128xi32>
      %c0_i32_79 = arith.constant 0 : i32
      %168 = vector.broadcast %c0_i32_79 : i32 to vector<1x8x128xi32>
      %169 = arith.cmpi eq, %0, %168 : vector<1x8x128xi32>
      %170 = arith.andi %167, %169 : vector<1x8x128xi1>
      %cst_80 = arith.constant 0.000000e+00 : f32
      %171 = vector.shape_cast %143 : vector<1x1xf32> to vector<1x1x1xf32>
      %172 = vector.broadcast %171 : vector<1x1x1xf32> to vector<1x8x128xf32>
      %173 = vector.broadcast %cst_80 : f32 to vector<1x8x128xf32>
      %174 = arith.select %170, %172, %173 : vector<1x8x128xi1>, vector<1x8x128xf32>
      %c0_i32_81 = arith.constant 0 : i32
      %175 = vector.broadcast %c0_i32_81 : i32 to vector<1x8x128xi32>
      %176 = arith.cmpi eq, %1, %175 : vector<1x8x128xi32>
      %c1_i32 = arith.constant 1 : i32
      %177 = vector.broadcast %c1_i32 : i32 to vector<1x8x128xi32>
      %178 = arith.cmpi eq, %0, %177 : vector<1x8x128xi32>
      %179 = arith.andi %176, %178 : vector<1x8x128xi1>
      %cst_82 = arith.constant 0.000000e+00 : f32
      %180 = vector.shape_cast %160 : vector<1x1xf32> to vector<1x1x1xf32>
      %181 = vector.broadcast %180 : vector<1x1x1xf32> to vector<1x8x128xf32>
      %182 = vector.broadcast %cst_82 : f32 to vector<1x8x128xf32>
      %183 = arith.select %179, %181, %182 : vector<1x8x128xi1>, vector<1x8x128xf32>
      %184 = arith.addf %174, %183 : vector<1x8x128xf32>
      %c0_i32_83 = arith.constant 0 : i32
      %185 = vector.broadcast %c0_i32_83 : i32 to vector<1x8x128xi32>
      %186 = arith.cmpi eq, %1, %185 : vector<1x8x128xi32>
      %c2_i32 = arith.constant 2 : i32
      %187 = vector.broadcast %c2_i32 : i32 to vector<1x8x128xi32>
      %188 = arith.cmpi eq, %0, %187 : vector<1x8x128xi32>
      %189 = arith.andi %186, %188 : vector<1x8x128xi1>
      %cst_84 = arith.constant 0.000000e+00 : f32
      %190 = vector.shape_cast %165 : vector<1x1xf32> to vector<1x1x1xf32>
      %191 = vector.broadcast %190 : vector<1x1x1xf32> to vector<1x8x128xf32>
      %192 = vector.broadcast %cst_84 : f32 to vector<1x8x128xf32>
      %193 = arith.select %189, %191, %192 : vector<1x8x128xi1>, vector<1x8x128xf32>
      %194 = arith.addf %184, %193 : vector<1x8x128xf32>
      %c0_85 = arith.constant 0 : index
      %c0_86 = arith.constant 0 : index
      %c0_87 = arith.constant 0 : index
      %195 = vector.load %arg9[%c0_85, %c0_86, %c0_87] : memref<1x8x128xf32, #tpu.memory_space<vmem>>, vector<1x8x128xf32>
      tpu.vector_store %arg9[%c0_85, %c0_86, %c0_87], %194 {strides = array<i32>} : memref<1x8x128xf32, #tpu.memory_space<vmem>>, vector<1x8x128xf32>,
    } else {
    }
    %c0 = arith.constant 0 : index
    %c0_1 = arith.constant 0 : index
    %5 = vector.load %arg5[%c0, %c0_1] : memref<8x16xf32, #tpu.memory_space<vmem>>, vector<8x16xf32>
    %6 = arith.mulf %5, %5 : vector<8x16xf32>
    %cst = arith.constant dense<0.000000e+00> : vector<8xf32>
    %7 = vector.multi_reduction <add>, %6, %cst [1] : vector<8x16xf32> to vector<8xf32>
    %8 = vector.shape_cast %7 : vector<8xf32> to vector<8x1xf32>
    %cst_2 = arith.constant 1.000000e-24 : f32
    %9 = vector.broadcast %cst_2 : f32 to vector<8x1xf32>
    %10 = arith.maximumf %8, %9 : vector<8x1xf32>
    %11 = math.rsqrt %10 : vector<8x1xf32>
    %12 = vector.broadcast %11 : vector<8x1xf32> to vector<8x16xf32>
    %13 = arith.mulf %5, %12 : vector<8x16xf32>
    %14 = arith.truncf %13 : vector<8x16xf32> to vector<8x16xbf16>
    %c0_3 = arith.constant 0 : index
    %c0_4 = arith.constant 0 : index
    %15 = vector.load %arg6[%c0_3, %c0_4] : memref<8x16xf32, #tpu.memory_space<vmem>>, vector<8x16xf32>
    %16 = arith.mulf %15, %15 : vector<8x16xf32>
    %cst_5 = arith.constant dense<0.000000e+00> : vector<8xf32>
    %17 = vector.multi_reduction <add>, %16, %cst_5 [1] : vector<8x16xf32> to vector<8xf32>
    %18 = vector.shape_cast %17 : vector<8xf32> to vector<8x1xf32>
    %cst_6 = arith.constant 1.000000e-24 : f32
    %19 = vector.broadcast %cst_6 : f32 to vector<8x1xf32>
    %20 = arith.maximumf %18, %19 : vector<8x1xf32>
    %21 = math.rsqrt %20 : vector<8x1xf32>
    %22 = vector.broadcast %21 : vector<8x1xf32> to vector<8x16xf32>
    %23 = arith.mulf %15, %22 : vector<8x16xf32>
    %24 = arith.truncf %23 : vector<8x16xf32> to vector<8x16xbf16>
    %c0_7 = arith.constant 0 : index
    %c0_8 = arith.constant 0 : index
    %25 = vector.load %arg7[%c0_7, %c0_8] : memref<8x80xbf16, #tpu.memory_space<vmem>>, vector<8x80xbf16>
    %c0_9 = arith.constant 0 : index
    %c0_10 = arith.constant 0 : index
    %26 = vector.load %arg10[%c0_9, %c0_10] : memref<8x16xbf16, #tpu.memory_space<vmem>>, vector<8x16xbf16>
    %c0_11 = arith.constant 0 : index
    %c0_12 = arith.constant 0 : index
    %27 = vector.load %arg11[%c0_11, %c0_12] : memref<8x16xbf16, #tpu.memory_space<vmem>>, vector<8x16xbf16>
    %c0_13 = arith.constant 0 : index
    %c0_14 = arith.constant 0 : index
    %28 = vector.load %arg12[%c0_13, %c0_14] : memref<8x1xf32, #tpu.memory_space<vmem>>, vector<8x1xf32>
    %c0_15 = arith.constant 0 : index
    %c0_16 = arith.constant 0 : index
    %29 = vector.load %arg4[%c0_15, %c0_16] : memref<8x80xbf16, #tpu.memory_space<vmem>>, vector<8x80xbf16>
    %cst_17 = arith.constant dense<0.000000e+00> : vector<8x8xf32>
    %30 = tpu.matmul %29, %25, %cst_17 {dimension_numbers = #tpu.dot_dimension_numbers<[1], [1], [0], [0], [0, 0, 1, 0], [], []>} : vector<8x80xbf16>, vector<8x80xbf16>, vector<8x8xf32> -> vector<8x8xf32>
    %cst_18 = arith.constant 1.000000e+00 : bf16
    %31 = vector.broadcast %cst_18 : bf16 to vector<1x80xbf16>
    %cst_19 = arith.constant dense<0.000000e+00> : vector<1x8xf32>
    %32 = tpu.matmul %31, %25, %cst_19 {dimension_numbers = #tpu.dot_dimension_numbers<[1], [1], [0], [0], [0, 0, 1, 0], [], []>} : vector<1x80xbf16>, vector<8x80xbf16>, vector<1x8xf32> -> vector<1x8xf32>
    %cst_20 = arith.constant 1.000000e+00 : f32
    %33 = vector.broadcast %cst_20 : f32 to vector<8x1xf32>
    %34 = arith.cmpf ogt, %28, %33 : vector<8x1xf32>
    %cst_21 = arith.constant 1.000000e+00 : f32
    %35 = vector.broadcast %cst_21 : f32 to vector<1x8xf32>
    %36 = arith.cmpf ogt, %32, %35 : vector<1x8xf32>
    %37 = vector.broadcast %34 : vector<8x1xi1> to vector<8x8xi1>
    %38 = vector.broadcast %36 : vector<1x8xi1> to vector<8x8xi1>
    %39 = arith.andi %37, %38 : vector<8x8xi1>
    %cst_22 = arith.constant 0.000000e+00 : f32
    %40 = vector.broadcast %cst_22 : f32 to vector<8x8xf32>
    %41 = arith.cmpf oeq, %30, %40 : vector<8x8xf32>
    %42 = arith.andi %39, %41 : vector<8x8xi1>
    %cst_23 = arith.constant 1.000000e+00 : f32
    %cst_24 = arith.constant 0.000000e+00 : f32
    %43 = vector.broadcast %cst_23 : f32 to vector<8x8xf32>
    %44 = vector.broadcast %cst_24 : f32 to vector<8x8xf32>
    %45 = arith.select %42, %43, %44 : vector<8x8xi1>, vector<8x8xf32>
    %cst_25 = arith.constant dense<0.000000e+00> : vector<8x8xf32>
    %46 = tpu.matmul %26, %14, %cst_25 {dimension_numbers = #tpu.dot_dimension_numbers<[1], [1], [0], [0], [0, 0, 1, 0], [], []>} : vector<8x16xbf16>, vector<8x16xbf16>, vector<8x8xf32> -> vector<8x8xf32>
    %cst_26 = arith.constant dense<0.000000e+00> : vector<8x8xf32>
    %47 = tpu.matmul %27, %24, %cst_26 {dimension_numbers = #tpu.dot_dimension_numbers<[1], [1], [0], [0], [0, 0, 1, 0], [], []>} : vector<8x16xbf16>, vector<8x16xbf16>, vector<8x8xf32> -> vector<8x8xf32>
    %cst_27 = arith.constant dense<0.000000e+00> : vector<8x8xf32>
    %48 = tpu.matmul %26, %24, %cst_27 {dimension_numbers = #tpu.dot_dimension_numbers<[1], [1], [0], [0], [0, 0, 1, 0], [], []>} : vector<8x16xbf16>, vector<8x16xbf16>, vector<8x8xf32> -> vector<8x8xf32>
    %cst_28 = arith.constant 3.000000e-01 : f32
    %49 = vector.broadcast %cst_28 : f32 to vector<8x8xf32>
    %50 = arith.subf %46, %49 : vector<8x8xf32>
    %cst_29 = arith.constant 0.000000e+00 : f32
    %51 = vector.broadcast %cst_29 : f32 to vector<8x8xf32>
    %52 = arith.maximumf %50, %51 : vector<8x8xf32>
    %cst_30 = arith.constant 3.000000e-01 : f32
    %53 = vector.broadcast %cst_30 : f32 to vector<8x8xf32>
    %54 = arith.subf %47, %53 : vector<8x8xf32>
    %cst_31 = arith.constant 0.000000e+00 : f32
    %55 = vector.broadcast %cst_31 : f32 to vector<8x8xf32>
    %56 = arith.maximumf %54, %55 : vector<8x8xf32>
    %57 = arith.addf %52, %56 : vector<8x8xf32>
    %cst_32 = arith.constant 3.000000e-01 : f32
    %58 = vector.broadcast %cst_32 : f32 to vector<8x8xf32>
    %59 = arith.subf %48, %58 : vector<8x8xf32>
    %cst_33 = arith.constant 0.000000e+00 : f32
    %60 = vector.broadcast %cst_33 : f32 to vector<8x8xf32>
    %61 = arith.maximumf %59, %60 : vector<8x8xf32>
    %62 = arith.addf %57, %61 : vector<8x8xf32>
    %63 = arith.mulf %62, %45 : vector<8x8xf32>
    %64 = vector.shape_cast %63 : vector<8x8xf32> to vector<1x8x8xf32>
    %cst_34 = arith.constant dense<0.000000e+00> : vector<1xf32>
    %65 = vector.multi_reduction <add>, %64, %cst_34 [1, 2] : vector<1x8x8xf32> to vector<1xf32>
    %66 = vector.shape_cast %65 : vector<1xf32> to vector<1x1x1xf32>
    %67 = vector.extract %66[0, 0, 0] : f32 from vector<1x1x1xf32>
    %68 = vector.broadcast %67 : f32 to vector<1x1xf32>
    %69 = vector.shape_cast %45 : vector<8x8xf32> to vector<1x8x8xf32>
    %cst_35 = arith.constant dense<0.000000e+00> : vector<1xf32>
    %70 = vector.multi_reduction <add>, %69, %cst_35 [1, 2] : vector<1x8x8xf32> to vector<1xf32>
    %71 = vector.shape_cast %70 : vector<1xf32> to vector<1x1x1xf32>
    %72 = vector.extract %71[0, 0, 0] : f32 from vector<1x1x1xf32>
    %73 = vector.broadcast %72 : f32 to vector<1x1xf32>
    %c0_36 = arith.constant 0 : index
    %c0_37 = arith.constant 0 : index
    %c0_38 = arith.constant 0 : index
    %74 = vector.load %arg9[%c0_36, %c0_37, %c0_38] : memref<1x8x128xf32, #tpu.memory_space<vmem>>, vector<1x8x128xf32>
    %c0_i32_39 = arith.constant 0 : i32
    %75 = vector.broadcast %c0_i32_39 : i32 to vector<1x8x128xi32>
    %76 = arith.cmpi eq, %1, %75 : vector<1x8x128xi32>
    %c3_i32 = arith.constant 3 : i32
    %77 = vector.broadcast %c3_i32 : i32 to vector<1x8x128xi32>
    %78 = arith.cmpi eq, %0, %77 : vector<1x8x128xi32>
    %79 = arith.andi %76, %78 : vector<1x8x128xi1>
    %cst_40 = arith.constant 0.000000e+00 : f32
    %80 = vector.shape_cast %68 : vector<1x1xf32> to vector<1x1x1xf32>
    %81 = vector.broadcast %80 : vector<1x1x1xf32> to vector<1x8x128xf32>
    %82 = vector.broadcast %cst_40 : f32 to vector<1x8x128xf32>
    %83 = arith.select %79, %81, %82 : vector<1x8x128xi1>, vector<1x8x128xf32>
    %c0_i32_41 = arith.constant 0 : i32
    %84 = vector.broadcast %c0_i32_41 : i32 to vector<1x8x128xi32>
    %85 = arith.cmpi eq, %1, %84 : vector<1x8x128xi32>
    %c4_i32 = arith.constant 4 : i32
    %86 = vector.broadcast %c4_i32 : i32 to vector<1x8x128xi32>
    %87 = arith.cmpi eq, %0, %86 : vector<1x8x128xi32>
    %88 = arith.andi %85, %87 : vector<1x8x128xi1>
    %cst_42 = arith.constant 0.000000e+00 : f32
    %89 = vector.shape_cast %73 : vector<1x1xf32> to vector<1x1x1xf32>
    %90 = vector.broadcast %89 : vector<1x1x1xf32> to vector<1x8x128xf32>
    %91 = vector.broadcast %cst_42 : f32 to vector<1x8x128xf32>
    %92 = arith.select %88, %90, %91 : vector<1x8x128xi1>, vector<1x8x128xf32>
    %93 = arith.addf %83, %92 : vector<1x8x128xf32>
    %94 = arith.addf %74, %93 : vector<1x8x128xf32>
    %c0_43 = arith.constant 0 : index
    %c0_44 = arith.constant 0 : index
    %c0_45 = arith.constant 0 : index
    %95 = vector.load %arg9[%c0_43, %c0_44, %c0_45] : memref<1x8x128xf32, #tpu.memory_space<vmem>>, vector<1x8x128xf32>
    tpu.vector_store %arg9[%c0_43, %c0_44, %c0_45], %94 {strides = array<i32>} : memref<1x8x128xf32, #tpu.memory_space<vmem>>, vector<1x8x128xf32>,
    return
  }
  func.func @transform_0(%arg0: i32, %arg1: i32) -> (i32, i32) {
    %c0_i32 = arith.constant 0 : i32
    %c0_i32_0 = arith.constant 0 : i32
    return %arg0, %c0_i32 : i32, i32
  }
  func.func @transform_1(%arg0: i32, %arg1: i32) -> (i32, i32) {
    %c0_i32 = arith.constant 0 : i32
    %c0_i32_0 = arith.constant 0 : i32
    return %arg0, %c0_i32 : i32, i32
  }
  func.func @transform_2(%arg0: i32, %arg1: i32) -> (i32, i32) {
    %c0_i32 = arith.constant 0 : i32
    %c0_i32_0 = arith.constant 0 : i32
    return %arg0, %c0_i32 : i32, i32
  }
  func.func @transform_3(%arg0: i32, %arg1: i32) -> (i32, i32) {
    %c0_i32 = arith.constant 0 : i32
    %c0_i32_0 = arith.constant 0 : i32
    return %arg1, %c0_i32 : i32, i32
  }
  func.func @transform_4(%arg0: i32, %arg1: i32) -> (i32, i32) {
    %c0_i32 = arith.constant 0 : i32
    %c0_i32_0 = arith.constant 0 : i32
    return %arg1, %c0_i32 : i32, i32
  }
  func.func @transform_5(%arg0: i32, %arg1: i32) -> (i32, i32) {
    %c0_i32 = arith.constant 0 : i32
    %c0_i32_0 = arith.constant 0 : i32
    return %arg1, %c0_i32 : i32, i32
  }
  func.func @transform_6(%arg0: i32, %arg1: i32) -> (i32, i32) {
    %c0_i32 = arith.constant 0 : i32
    %c0_i32_0 = arith.constant 0 : i32
    %c0_i32_1 = arith.constant 0 : i32
    return %c0_i32, %c0_i32_0 : i32, i32
  }
  func.func @transform_7(%arg0: i32, %arg1: i32) -> (i32, i32, i32) {
    %c0_i32 = arith.constant 0 : i32
    %c0_i32_0 = arith.constant 0 : i32
    %c0_i32_1 = arith.constant 0 : i32
    return %arg0, %c0_i32, %c0_i32_0 : i32, i32, i32
  }
}

</mosaic_0001>

<bundles_post_ra>
// kernel: tpu_custom_call.1
= control target key start
LH: loop header
LB: loop body
LE: loop exit
PB: predicated region body
PF: predicated region fallthrough
CT: control target
= control target key end

     0   :  { %vm39_vm0 = vcmask 130048   ;;  %s1083_s0 = inlined_call_operand.vmem [shape: f32[8,16], index: 0, kind: input, shape index: {}]   ;;  %s1084_s1 = inlined_call_operand.vmem [shape: f32[8,16], index: 1, kind: input, shape index: {}]   ;;  %s1085_s2 = inlined_call_operand.vmem [shape: bf16[8,80], index: 2, kind: input, shape index: {}]   ;;  %s1086_s3 = inlined_call_operand.vmem [shape: f32[8,16], index: 3, kind: input, shape index: {}]   ;;  %s1087_s4 = inlined_call_operand.vmem [shape: f32[8,16], index: 4, kind: input, shape index: {}]   ;;  %s1088_s5 = inlined_call_operand.vmem [shape: bf16[8,80], index: 5, kind: input, shape index: {}]   ;;  %s1089_s6 = inlined_call_operand.vmem [shape: f32[80,16], index: 6, kind: input, shape index: {}]   ;;  %s1090_s7 = inlined_call_operand.hbm [shape: f32[1,8,128], index: 7, kind: output, shape index: {}]  }
   0x1   :  { %v835_v0 = vld [vmem:[%s1089_s6] sm:$0xff]  ;;  %v840_v1 = vld [vmem:[%s1089_s6 + $0x10] sm:$0xff]  ;;  %v845_v2 = vld [vmem:[%s1089_s6 + $0x8] sm:$0xff] }
   0x2   :  { %v77_v3 = vmul.f32 %v835_v0, %v835_v0  ;;  %v79_v4 = vmul.f32 %v840_v1, %v840_v1  ;;  %v78_v5 = vmul.f32 %v845_v2, %v845_v2  ;;  %v856_v6 = vld [vmem:[%s1089_s6 + $0x18] sm:$0xff]  ;;  %v863_v8 = vld [vmem:[%s1089_s6 + $0x28] sm:$0xff]  ;;  %v868_v9 = vld [vmem:[%s1089_s6 + $0x20] sm:$0xff] }
   0x3   :  { %v80_v7 = vmul.f32 %v856_v6, %v856_v6  ;;  %v82_v14 = vmul.f32 %v863_v8, %v863_v8  ;;  %v81_v15 = vmul.f32 %v868_v9, %v868_v9 }
   0x4   :  { %v87_v10 = vsel %vm39_vm0, %v77_v3, 0.0  ;;  %v93_v11 = vsel %vm39_vm0, %v79_v4, 0.0  ;;  %v90_v12 = vsel %vm39_vm0, %v78_v5, 0.0 }
   0x5   :  { %88 = vadd.xlane.f32.xlu0 %v87_v10  ;;  %94 = vadd.xlane.f32.xlu1 %v93_v11  ;;  %v96_v13 = vsel %vm39_vm0, %v80_v7, 0.0 }
   0x6   :  { %12 = vsyncpa [#allocation6], 0  ;;  %v881_v16 = vld [vmem:[%s1089_s6 + $0x38] sm:$0xff]  ;;  %v886_v17 = vld [vmem:[%s1089_s6 + $0x30] sm:$0xff]  ;;  %v102_v18 = vsel %vm39_vm0, %v82_v14, 0.0  ;;  %v99_v19 = vsel %vm39_vm0, %v81_v15, 0.0 }
   0x7   :  { %v84_v20 = vmul.f32 %v881_v16, %v881_v16  ;;  %v83_v21 = vmul.f32 %v886_v17, %v886_v17  ;;  %v897_v22 = vld [vmem:[%s1089_s6 + $0x48] sm:$0xff]  ;;  %v902_v23 = vld [vmem:[%s1089_s6 + $0x40] sm:$0xff]  ;;  %vm61_vm1 = vcmask 654336   ;;  %v787_v45 = vmov 0.0   ;;  %s791_s10 = smov [#allocation5]  }
   0x8   :  { %v86_v26 = vmul.f32 %v897_v22, %v897_v22  ;;  %v85_v27 = vmul.f32 %v902_v23, %v902_v23  ;;  %v913_v28 = vld [vmem:[%s1084_s1] sm:$0xff]  ;;  %660 = vmatprep.subr.bf16.mxu0 %v787_v45  ;;  %674 = vmatprep.subr.bf16.mxu1 %v787_v45  ;;  %vm788_vm2 = vmmov 0   ;;  %v789_v46 = vmov 0   ;;  %s618_s11 = sshll.u32 %s791_s10, 4  ;;  %s619_s11 = int_to_ptr.vmem [resolvable:$true] %s618_s11 }
   0x9   :  { %91 = vadd.xlane.f32.xlu0 %v90_v12  ;;  %97 = vadd.xlane.f32.xlu1 %v96_v13  ;;  %v108_v24 = vsel %vm39_vm0, %v84_v20, 0.0  ;;  %v105_v25 = vsel %vm39_vm0, %v83_v21, 0.0  ;;  %v918_v29 = vld [vmem:[%s1083_s0] sm:$0xff]  ;;  %v47_v32 = vmul.f32 %v913_v28, %v913_v28  ;;  %vm65_vm3 = vcmask 7168   ;;  %s763_s12 = scalar_lea.vmem %s619_s11, 128  ;;  %p768_p1 = scmp.lt.s32.totalorder %s619_s11, %s619_s11 }
   0xa   :  { %v114_v30 = vsel %vm39_vm0, %v86_v26, 0.0  ;;  %v111_v31 = vsel %vm39_vm0, %v85_v27, 0.0  ;;  %v38_v33 = vmul.f32 %v918_v29, %v918_v29  ;;  %v929_v34 = vld [vmem:[%s1087_s4] sm:$0xff]  ;;  %670 = vmatprep.mubr.msk.bf16.mxu0 %vm788_vm2, %v787_v45  ;;  %684 = vmatprep.mubr.msk.bf16.mxu1 %vm788_vm2, %v787_v45  ;;  %vm58_vm4 = vcmask 125952   ;;  %p764_p0 = scmp.ne.s32.totalorder %s619_s11, %s763_s12  ;;  %p769_p2 = scmp.lt.s32.totalorder %s763_s12, %s763_s12 }
   0xb   :  { %v934_v35 = vld [vmem:[%s1086_s3] sm:$0xff]  ;;  %v48_v36 = vsel %vm39_vm0, %v47_v32, 0.0  ;;  %v317_v38 = vmul.f32 %v929_v34, %v929_v34  ;;  %733 = vset.pattern.permute.xlu1 %v789_v46  ;;  %734 = vset.pattern.permute.xlu0 %v789_v46  ;;  %vm578_vm12 = vcmask 64512  }
   0xc   :  { %v40_v37 = vsel %vm39_vm0, %v38_v33, 0.0  ;;  %v307_v39 = vmul.f32 %v934_v35, %v934_v35  ;;  %v54_v40 = vld [vmem:[%s1085_s2] sm:$0xf]  ;;  %p770_p3 = por %p769_p2, %p768_p1 }
   0xd   :  { %103 = vadd.xlane.f32.xlu1 %v102_v18  ;;  %100 = vadd.xlane.f32.xlu0 %v99_v19  ;;  %v318_v41 = vsel %vm39_vm0, %v317_v38, 0.0  ;;  %v947_v43 = vunpack.c.l.bf16 %v54_v40 }
   0xe   :  { %v309_v42 = vsel %vm39_vm0, %v307_v39, 0.0  ;;  %p771_p4 = pnand %p770_p3, %p764_p0 }
   0xf   :  { %v62_v44 = vsel %vm61_vm1, %v947_v43, 0.0 }
  0x11   :  { %109 = vadd.xlane.f32.xlu1 %v108_v24  ;;  %106 = vadd.xlane.f32.xlu0 %v105_v25 }
  0x15   :  { %115 = vadd.xlane.f32.xlu1 %v114_v30  ;;  %112 = vadd.xlane.f32.xlu0 %v111_v31 }
  0x19   :  { %49 = vadd.xlane.f32.xlu1 %v48_v36  ;;  %41 = vadd.xlane.f32.xlu0 %v40_v37 }
  0x1d   :  { %319 = vadd.xlane.f32.xlu1 %v318_v41  ;;  %310 = vadd.xlane.f32.xlu0 %v309_v42 }
  0x21   :  { %63 = vadd.xlane.f32.xlu0 %v62_v44 }
  0x92   :  { %v89_v47 = vpop.xlane.xlu0 %88  ;;  %v95_v48 = vpop.xlane.xlu1 %94 }
  0x93   :  { %v117_v49 = vmax.f32 %v89_v47, 1e-24  ;;  %v119_v50 = vmax.f32 %v95_v48, 1e-24 }
  0x95   :  { %735 = vrsqrt.f32 %v117_v49 }
  0x96   :  { %v92_v51 = vpop.xlane.xlu0 %91  ;;  %v98_v52 = vpop.xlane.xlu1 %97 }
  0x97   :  { %v118_v53 = vmax.f32 %v92_v51, 1e-24  ;;  %v120_v54 = vmax.f32 %v98_v52, 1e-24 }
  0x99   :  { %737 = vrsqrt.f32 %v118_v53 }
  0x9a   :  { %739 = vrsqrt.f32 %v119_v50  ;;  %v104_v55 = vpop.xlane.xlu1 %103  ;;  %v101_v56 = vpop.xlane.xlu0 %100 }
  0x9b   :  { %741 = vrsqrt.f32 %v120_v54  ;;  %v122_v57 = vmax.f32 %v104_v55, 1e-24  ;;  %v121_v58 = vmax.f32 %v101_v56, 1e-24 }
  0x9d   :  { %743 = vrsqrt.f32 %v122_v57 }
  0x9e   :  { %v110_v59 = vpop.xlane.xlu1 %109  ;;  %v107_v60 = vpop.xlane.xlu0 %106  ;;  %745 = vrsqrt.f32 %v121_v58 }
  0x9f   :  { %v736_v61 = vpop.eup %735  ;;  %v124_v4 = vmax.f32 %v110_v59, 1e-24  ;;  %v123_v11 = vmax.f32 %v107_v60, 1e-24 }
  0xa0   :  { %v137_v7 = vmul.f32 %v736_v61, %v835_v0 }
  0xa1   :  { %747 = vrsqrt.f32 %v124_v4 }
  0xa2   :  { %v116_v62 = vpop.xlane.xlu1 %115  ;;  %v113_v63 = vpop.xlane.xlu0 %112  ;;  %749 = vrsqrt.f32 %v123_v11 }
  0xa3   :  { %v738_v3 = vpop.eup %737  ;;  %v126_v27 = vmax.f32 %v116_v62, 1e-24  ;;  %v125_v30 = vmax.f32 %v113_v63, 1e-24 }
  0xa4   :  { %v740_v5 = vpop.eup %739  ;;  %v138_v10 = vmul.f32 %v738_v3, %v845_v2  ;;  %v790_v3 = vmov 1065369472  }
  0xa5   :  { %v742_v12 = vpop.eup %741  ;;  %v139_v21 = vmul.f32 %v740_v5, %v840_v1 }
  0xa6   :  { %v147_v13 = vpack.c.bf16 %v138_v10, %v137_v7  ;;  %v50_v14 = vpop.xlane.xlu1 %49  ;;  %v42_v15 = vpop.xlane.xlu0 %41  ;;  %v140_v24 = vmul.f32 %v742_v12, %v856_v6  ;;  %v29_v7 = vlaneseq }
  0xa7   :  { %v51_v18 = vmax.f32 %v50_v14, 1e-24  ;;  %v43_v19 = vmax.f32 %v42_v15, 1e-24  ;;  %v744_v0 = vpop.eup %743 }
  0xa8   :  { %v156_v20 = vsel %vm39_vm0, %v147_v13, 0  ;;  %v746_v25 = vpop.eup %745  ;;  %v148_v26 = vpack.c.bf16 %v140_v24, %v139_v21  ;;  %v142_v1 = vmul.f32 %v744_v0, %v863_v8 }
  0xa9   :  { %661 = vmatpush3.bf16.xpose.msra.mxu0 %v156_v20  ;;  %675 = vmatpush3.bf16.xpose.msra.mxu1 %v156_v20  ;;  %751 = vrsqrt.f32 %v51_v18  ;;  %v141_v31 = vmul.f32 %v746_v25, %v868_v9  ;;  %v266_v20 = vsub.f32 1.0, %v947_v43 }
  0xaa   :  { %662 = vmatprep.subr.bf16.mxu0 %v787_v45  ;;  %676 = vmatprep.subr.bf16.mxu1 %v787_v45  ;;  %753 = vrsqrt.f32 %v43_v19  ;;  %v311_v2 = vpop.xlane.xlu0 %310  ;;  %v159_v32 = vsel %vm39_vm0, %v148_v26, 0  ;;  %v320_v50 = vpop.xlane.xlu1 %319  ;;  %v1023_v26 = vshrl.u32 %v29_v7, 7 }
  0xab   :  { %755 = vrsqrt.f32 %v126_v27  ;;  %v748_v33 = vpop.eup %747  ;;  %v149_v37 = vpack.c.bf16 %v142_v1, %v141_v31  ;;  %v312_v51 = vmax.f32 %v311_v2, 1e-24 }
  0xac   :  { %757 = vrsqrt.f32 %v125_v30  ;;  %v750_v36 = vpop.eup %749  ;;  %v144_v42 = vmul.f32 %v748_v33, %v881_v16  ;;  %v321_v16 = vmax.f32 %v320_v50, 1e-24  ;;  %vm290_vm13 = vcmp.eq.s32.totalorder %v1023_v26, 0 }
  0xad   :  { %v162_v40 = vsel %vm39_vm0, %v149_v37, 0  ;;  %v143_v41 = vmul.f32 %v750_v36, %v886_v17  ;;  %v430_v36 = vsub.s32 0, %v1023_v26 }
  0xae   :  { %v968_v6 = vpop.xlane.xlu0 %63  ;;  %759 = vrsqrt.f32 %v321_v16 }
  0xaf   :  { %66 = vst.msk [vmem:[#allocation4] sm:$0xff] %vm65_vm3, %v968_v6  ;;  %761 = vrsqrt.f32 %v312_v51 }
  0xb1   :  { %663 = vmatpush3.bf16.xpose.msra.mxu0 %v159_v32  ;;  %677 = vmatpush3.bf16.xpose.msra.mxu1 %v159_v32 }
  0xb2   :  { %664 = vmatprep.subr.bf16.mxu0 %v787_v45  ;;  %678 = vmatprep.subr.bf16.mxu1 %v787_v45 }
  0xb3   :  { %v752_v9 = vpop.eup %751 }
  0xb4   :  { %v754_v38 = vpop.eup %753  ;;  %v53_v8 = vmul.f32 %v752_v9, %v913_v28 }
  0xb5   :  { %v45_v39 = vmul.f32 %v754_v38, %v918_v29  ;;  %v756_v28 = vpop.eup %755  ;;  %v150_v29 = vpack.c.bf16 %v144_v42, %v143_v41 }
  0xb6   :  { %v57_v44 = vpack.c.bf16 %v53_v8, %v53_v8  ;;  %v328_v47 = vld [vmem:[#allocation4] sm:$0xff]  ;;  %v758_v17 = vpop.eup %757  ;;  %v146_v54 = vmul.f32 %v756_v28, %v897_v22  ;;  %v325_v22 = vld [vmem:[%s1088_s5] sm:$0xf] }
  0xb7   :  { %v56_v48 = vpack.c.bf16 %v45_v39, %v45_v39  ;;  %vm420_vm5 = vcmp.gt.f32.partialorder %v328_v47, 1.0  ;;  %v165_v52 = vsel %vm39_vm0, %v150_v29, 0  ;;  %v145_v53 = vmul.f32 %v758_v17, %v902_v23 }
  0xb8   :  { %60 = vst.msk [vmem:[#allocation3] sm:$0xf] %vm58_vm4, %v57_v44  ;;  %v422_v49 = vsel %vm420_vm5, 1, %v789_v46  ;;  %v760_v57 = vpop.eup %759  ;;  %v335_v58 = vsel %vm61_vm1, %v325_v22, 0 }
  0xb9   :  { %665 = vmatpush3.bf16.xpose.msra.mxu0 %v162_v40  ;;  %679 = vmatpush3.bf16.xpose.msra.mxu1 %v162_v40  ;;  %59 = vst.msk [vmem:[#allocation2] sm:$0xf] %vm58_vm4, %v56_v48  ;;  %v151_v55 = vpack.c.bf16 %v146_v54, %v145_v53  ;;  %v762_v23 = vpop.eup %761  ;;  %v323_v60 = vmul.f32 %v760_v57, %v929_v34  ;;  %v329_v34 = vld [vmem:[%s1085_s2] sm:$0xf] }
  0xba   :  { %666 = vmatprep.subr.bf16.mxu0 %v787_v45  ;;  %680 = vmatprep.subr.bf16.mxu1 %v787_v45  ;;  %v314_v59 = vmul.f32 %v762_v23, %v934_v35 }
  0xbb   :  { %424 = vperm.xlu1 %733, %v422_v49   ;;  %v168_v56 = vsel %vm39_vm0, %v151_v55, 0  ;;  %v324_v62 = vpack.c.bf16 %v323_v60, %v323_v60 }
  0xbc   :  { %v315_v61 = vpack.c.bf16 %v314_v59, %v314_v59 }
  0xbd   :  { %v487_v63 = vsel %vm39_vm0, %v324_v62, 0 }
  0xbe   :  { %v441_v35 = vsel %vm39_vm0, %v315_v61, 0 }
  0xbf   :  { %v327_v5 = vld [vmem:[#allocation3] sm:$0xf] }
  0xc0   :  { %v326_v4 = vld [vmem:[#allocation2] sm:$0xf] }
  0xc1   :  { %667 = vmatpush3.bf16.xpose.msra.mxu0 %v165_v52  ;;  %681 = vmatpush3.bf16.xpose.msra.mxu1 %v165_v52 }
  0xc2   :  { %668 = vmatprep.subr.bf16.mxu0 %v787_v45  ;;  %682 = vmatprep.subr.bf16.mxu1 %v787_v45 }
  0xc9   :  { %669 = vmatpush3.bf16.xpose.msra.mxu0 %v168_v56  ;;  %683 = vmatpush3.bf16.xpose.msra.mxu1 %v168_v56 }
  0xca   :  { %688 = vmatprep.subr.bf16.mxu0 %v787_v45  ;;  %694 = vmatprep.subr.bf16.mxu1 %v787_v45 }
  0xd0   :  { %671 = vmatmul.mubr.msk.bf16.vlgmr.msra.gmra.mrb[0].mxu0 %vm39_vm0, %v56_v48  ;;  %685 = vmatmul.mubr.msk.bf16.vlgmr.msra.gmra.mrb[0].mxu1 %vm39_vm0, %v57_v44 }
  0xd1   :  { %689 = vmatpush3.bf16.xpose.msra.mxu0 %v335_v58  ;;  %695 = vmatpush3.bf16.xpose.msra.mxu1 %v335_v58 }
  0xd2   :  { %690 = vmatprep.mubr.msk.bf16.mxu0 %vm788_vm2, %v787_v45  ;;  %696 = vmatprep.mubr.msk.bf16.mxu1 %vm788_vm2, %v787_v45 }
  0xd3   :  { %700 = vmatprep.subr.bf16.mxu0 %v787_v45  ;;  %706 = vmatprep.subr.bf16.mxu1 %v787_v45 }
  0xd8   :  { %691 = vmatmul.mubr.msk.bf16.vlgmr.msra.gmra.mrb[4].mxu0 %vm61_vm1, %v329_v34  ;;  %697 = vmatmul.mubr.msk.bf16.vlgmr.msra.gmra.mrb[4].mxu1 %vm61_vm1, %v790_v3  ;;  %v30_v3 = vand.u32 127, %v29_v7 }
  0xd9   :  { %701 = vmatpush3.bf16.xpose.msra.mxu0 %v441_v35  ;;  %707 = vmatpush3.bf16.xpose.msra.mxu1 %v487_v63 }
  0xda   :  { %702 = vmatprep.mubr.msk.bf16.mxu0 %vm788_vm2, %v787_v45  ;;  %708 = vmatprep.mubr.msk.bf16.mxu1 %vm788_vm2, %v787_v45  ;;  %vm291_vm14 = vcmp.eq.s32.totalorder %v30_v3, 0  ;;  %vm601_vm4 = vcmp.eq.s32.totalorder %v30_v3, 3 }
  0xdb   :  { %712 = vmatprep.subr.bf16.mxu0 %v787_v45  ;;  %vm1039_vm15 = vmand %vm290_vm13, %vm291_vm14 }
  0xdc   :  { %vm1051_vm5 = vmand %vm290_vm13, %vm601_vm4 }
  0xe0   :  { %703 = vmatmul.mubr.msk.bf16.vlgmr.msra.gmra.mrb[8].mxu0 %vm39_vm0, %v326_v4  ;;  %709 = vmatmul.mubr.msk.bf16.vlgmr.msra.gmra.mrb[8].mxu1 %vm39_vm0, %v327_v5 }
  0xe1   :  { %713 = vmatpush3.bf16.xpose.msra.mxu0 %v487_v63  ;;  %714 = vmatprep.mubr.msk.bf16.mxu0 %vm788_vm2, %v787_v45  ;;  %vm300_vm2 = vcmp.eq.s32.totalorder %v30_v3, 2 }
  0xe2   :  { %vm1047_vm3 = vmand %vm290_vm13, %vm300_vm2 }
  0xe8   :  { %715 = vmatmul.mubr.msk.bf16.vlgmr.msra.gmra.mrb[12].mxu0 %vm39_vm0, %v326_v4  ;;  %vm295_vm0 = vcmp.eq.s32.totalorder %v30_v3, 1 }
 0x13a   :  { %v425_v33 = vpop.permute.xlu1 %424 }
 0x13b   :  { %vm426_vm7 = vcmp.eq.s32.totalorder %v425_v33, 1 }
 0x1a3   :  { %v204_v10 = vpop.f32.mrb[0].mxu0  ;;  %v247_v11 = vpop.f32.mrb[0].mxu1 }
 0x1a4   :  { %v253_v12 = vsub.f32 2.0, %v204_v10  ;;  %v628_v13 = vadd.f32 -0.3, %v204_v10  ;;  %v672_v14 = vpop.f32.mrb[1].mxu0  ;;  %v629_v15 = vadd.f32 -0.3, %v247_v11 }
 0x1a5   :  { %v207_v18 = vpop.f32.mrb[2].mxu0  ;;  %v686_v19 = vpop.f32.mrb[1].mxu1 }
 0x1a6   :  { %v268_v21 = vmax.f32 %v628_v13, 0.0  ;;  %v254_v24 = vsub.f32 %v253_v12, %v247_v11  ;;  %v270_v0 = vmax.f32 %v629_v15, 0.0  ;;  %v673_v2 = vpop.f32.mrb[3].mxu0  ;;  %v250_v25 = vpop.f32.mrb[2].mxu1  ;;  %v283_v11 = vrot.slane %v968_v6, 4 }
 0x1a7   :  { %v687_v27 = vpop.f32.mrb[3].mxu1 }
 0x1a8   :  { %v271_v30 = vadd.f32 %v270_v0, %v268_v21  ;;  %v255_v31 = vmul.f32 %v254_v24, %v947_v43  ;;  %v284_v12 = vadd.f32 %v283_v11, %v968_v6 }
 0x1aa   :  { %v256_v1 = vsel %vm61_vm1, %v255_v31, 0.0  ;;  %v272_v32 = vmul.f32 %v271_v30, %v266_v20  ;;  %v285_v19 = vrot.slane %v284_v12, 2 }
 0x1ab   :  { %v414_v37 = vpop.f32.mrb[4].mxu1  ;;  %257 = vadd.xlane.f32.xlu0 %v256_v1  ;;  %v371_v9 = vpop.f32.mrb[4].mxu0 }
 0x1ac   :  { %vm421_vm6 = vcmp.gt.f32.partialorder %v414_v37, 1.0  ;;  %v692_v38 = vpop.f32.mrb[5].mxu0  ;;  %v698_v8 = vpop.f32.mrb[5].mxu1  ;;  %v273_v44 = vsel %vm61_vm1, %v272_v32, 0.0  ;;  %vm434_vm9 = vcmp.eq.f32.partialorder %v371_v9, 0.0  ;;  %vm1043_vm1 = vmand %vm290_vm13, %vm295_vm0  ;;  %v286_v2 = vadd.f32 %v285_v19, %v284_v12 }
 0x1ad   :  { %v427_v39 = vsel %vm421_vm6, 1, %v789_v46  ;;  %v374_v40 = vpop.f32.mrb[6].mxu0  ;;  %v417_v41 = vpop.f32.mrb[6].mxu1  ;;  %vm605_vm6 = vcmp.eq.s32.totalorder %v30_v3, 4 }
 0x1ae   :  { %v693_v42 = vpop.f32.mrb[7].mxu0  ;;  %v431_v43 = vrot.slane %v427_v39, %v430_v36  ;;  %v699_v47 = vpop.f32.mrb[7].mxu1  ;;  %v287_v31 = vrot.slane %v286_v2, 1 }
 0x1af   :  { %274 = vadd.xlane.f32.xlu0 %v273_v44 }
 0x1b0   :  { %vm432_vm8 = vcmp.eq.s32.totalorder %v431_v43, 1  ;;  %v288_v33 = vadd.f32 %v287_v31, %v286_v2 }
 0x1b1   :  { %vm433_vm10 = vmand %vm426_vm7, %vm432_vm8 }
 0x1b2   :  { %vm1030_vm11 = vmand %vm433_vm10, %vm434_vm9 }
 0x1b3   :  { %v477_v49 = vpop.f32.mrb[8].mxu0  ;;  %v523_v50 = vpop.f32.mrb[8].mxu1  ;;  %v436_v62 = vsel %vm1030_vm11, 1.0, %v787_v45  ;;  %vm1055_vm7 = vmand %vm290_vm13, %vm605_vm6 }
 0x1b4   :  { %v635_v28 = vadd.f32 -0.3, %v477_v49  ;;  %v636_v46 = vadd.f32 -0.3, %v523_v50  ;;  %v704_v29 = vpop.f32.mrb[9].mxu0  ;;  %v710_v17 = vpop.f32.mrb[9].mxu1 }
 0x1b5   :  { %v480_v16 = vpop.f32.mrb[10].mxu0  ;;  %v526_v51 = vpop.f32.mrb[10].mxu1  ;;  %v589_v63 = vsel %vm578_vm12, %v436_v62, 0.0 }
 0x1b6   :  { %v570_v52 = vmax.f32 %v635_v28, 0.0  ;;  %v572_v53 = vmax.f32 %v636_v46, 0.0  ;;  %v705_v54 = vpop.f32.mrb[11].mxu0  ;;  %v711_v55 = vpop.f32.mrb[11].mxu1 }
 0x1b8   :  { %v573_v56 = vadd.f32 %v572_v53, %v570_v52 }
 0x1bb   :  { %v563_v57 = vpop.f32.mrb[12].mxu0 }
 0x1bc   :  { %v637_v23 = vadd.f32 -0.3, %v563_v57  ;;  %v716_v22 = vpop.f32.mrb[13].mxu0 }
 0x1bd   :  { %v566_v58 = vpop.f32.mrb[14].mxu0 }
 0x1be   :  { %v575_v59 = vmax.f32 %v637_v23, 0.0  ;;  %v717_v60 = vpop.f32.mrb[15].mxu0 }
 0x1c0   :  { %v576_v61 = vadd.f32 %v575_v59, %v573_v56 }
 0x1c2   :  { %v577_v34 = vmul.f32 %v576_v61, %v436_v62 }
 0x1c4   :  { %v579_v35 = vsel %vm578_vm12, %v577_v34, 0.0 }
 0x1c5   :  { %580 = vadd.xlane.f32.xlu0 %v579_v35 }
 0x1c9   :  { %590 = vadd.xlane.f32.xlu0 %v589_v63 }
 0x238   :  { %v258_v13 = vpop.xlane.xlu0 %257 }
 0x239   :  { %v259_v14 = vrot.slane %v258_v13, 4 }
 0x23b   :  { %v260_v15 = vadd.f32 %v259_v14, %v258_v13 }
 0x23c   :  { %v275_v18 = vpop.xlane.xlu0 %274 }
 0x23d   :  { %v261_v20 = vrot.slane %v260_v15, 2  ;;  %v276_v21 = vrot.slane %v275_v18, 4 }
 0x23f   :  { %v277_v24 = vadd.f32 %v276_v21, %v275_v18  ;;  %v262_v0 = vadd.f32 %v261_v20, %v260_v15 }
 0x241   :  { %v278_v25 = vrot.slane %v277_v24, 2  ;;  %v263_v26 = vrot.slane %v262_v0, 1 }
 0x243   :  { %v264_v27 = vadd.f32 %v263_v26, %v262_v0  ;;  %v279_v30 = vadd.f32 %v278_v25, %v277_v24 }
 0x245   :  { %718 = vpush %v264_v27  ;;  %v280_v1 = vrot.slane %v279_v30, 1 }
 0x247   :  { %v281_v32 = vadd.f32 %v280_v1, %v279_v30 }
 0x249   :  { %720 = vpush %v281_v32 }
 0x24a   :  { %722 = vpush %v288_v33 }
 0x252   :  { %v581_v6 = vpop.xlane.xlu0 %580 }
 0x253   :  { %v582_v36 = vrot.slane %v581_v6, 4 }
 0x255   :  { %v583_v37 = vadd.f32 %v582_v36, %v581_v6 }
 0x256   :  { %v591_v9 = vpop.xlane.xlu0 %590 }
 0x257   :  { %v584_v38 = vrot.slane %v583_v37, 2  ;;  %v592_v8 = vrot.slane %v591_v9, 4 }
 0x259   :  { %v593_v39 = vadd.f32 %v592_v8, %v591_v9  ;;  %v585_v40 = vadd.f32 %v584_v38, %v583_v37 }
 0x25b   :  { %v594_v41 = vrot.slane %v593_v39, 2  ;;  %v586_v42 = vrot.slane %v585_v40, 1 }
 0x25d   :  { %v595_v44 = vadd.f32 %v594_v41, %v593_v39  ;;  %v587_v43 = vadd.f32 %v586_v42, %v585_v40 }
 0x25f   :  { %724 = vpush %v587_v43  ;;  %v596_v47 = vrot.slane %v595_v44, 1 }
 0x261   :  { %v597_v48 = vadd.f32 %v596_v47, %v595_v44 }
 0x263   :  { %726 = vpush %v597_v48 }
 0x276   :  { %s719_s2 = spop %718 }
 0x277   :  { %v293_v49 = vstv %s719_s2 }
 0x278   :  { %v294_v28 = vsel %vm1039_vm15, %v293_v49, 0.0 }
 0x27a   :  { %s721_s29 = spop %720 }
 0x27b   :  { %v297_v50 = vstv %s721_s29  ;;  %s723_s30 = spop %722 }
 0x27c   :  { %v298_v46 = vsel %vm1043_vm1, %v297_v50, 0.0  ;;  %v302_v29 = vstv %s723_s30 }
 0x27d   :  { %v299_v17 = vadd.f32 %v298_v46, %v294_v28  ;;  %v303_v16 = vsel %vm1047_vm3, %v302_v29, 0.0 }
 0x27f   :  { %v304_v51 = vadd.f32 %v303_v16, %v299_v17 }
 0x290   :  { %s725_s8 = spop %724 }
 0x291   :  { %v603_v52 = vstv %s725_s8 }
 0x292   :  { %v604_v54 = vsel %vm1051_vm5, %v603_v52, 0.0 }
 0x294   :  { %s727_s9 = spop %726 }
 0x295   :  { %v607_v53 = vstv %s727_s9 }
 0x296   :  { %v608_v55 = vsel %vm1055_vm7, %v607_v53, 0.0 }
 0x297   :  { %v609_v56 = vadd.f32 %v608_v55, %v604_v54 }
 0x299   :  { %v610_v57 = vadd.f32 %v609_v56, %v304_v51 }
 0x29b   :  { %611 = vst [vmem:[#allocation5] sm:$0xff] %v610_v57 }
 0x29c   :  { %774 = shalt.err (!%p771_p4)
}
 0x29d   :  { %s775_s15 = scalar_lea.hbm %s1090_s7, 128 }
 0x29e   :  { %p776_p5 = scmp.ne.s32.totalorder %s1090_s7, %s775_s15  ;;  %p779_p6 = scmp.lt.u32.totalorder %s775_s15, %s1090_s7 }
 0x2a0   :  { %p781_p7 = pnand %p779_p6, %p776_p5 }
 0x2a2   :  { %784 = shalt.err (!%p781_p7)
}
 0x2a3   :  { %621 = dma.vmem_to_hbm [thread:$0]  %s619_s11, 128, %s1090_s7, [#allocation6]  }
 0x2a4   :  { %785 = dma.done.wait [#allocation6], 128  }
 0x2a5   :  { %786 = vsyncadd [#allocation6], 4294967168 }
 0x2a6   :  { %625 = vsyncpa [#allocation6], 1 }

</bundles_post_ra>
